<compile_context>
chip_gen: v6e
topology: v6e:2x2x1
jax: 0.10.0
libtpu: 0.0.40
codegen_flags: <defaults>
</compile_context>

<pallas_src>
import jax
import jax.numpy as jnp
from jax.experimental import pallas as pl
from jax.experimental.pallas import tpu as pltpu


def _mlp_feat_kernel(x_ref, w1_ref, b1_ref, w2_ref, b2_ref, o_ref):
    # x_ref / o_ref : (nf, tn)  -- tn is the lane axis, multiple of 128
    # w1_ref: (hidden, nf), b1_ref: (hidden, 1)   (PyTorch nn.Linear layouts)
    # w2_ref: (nf, hidden), b2_ref: (nf, 1)
    x = x_ref[...]                                           # native dtype -> MXU
    hid = jnp.dot(w1_ref[...], x, preferred_element_type=jnp.float32)
    hid = jnp.maximum(hid + b1_ref[...].astype(jnp.float32), 0.0)   # bias + ReLU (f32)
    # (Dropout: identity at inference.)
    # Second matmul fed in the input dtype (MXU-native); no-op for f32 inputs,
    # deliberate precision choice for bf16.
    y = jnp.dot(w2_ref[...], hid.astype(x.dtype),
                preferred_element_type=jnp.float32)
    o_ref[...] = (y + b2_ref[...].astype(jnp.float32)).astype(o_ref.dtype)


def _round_up(v, m):
    return (v + m - 1) // m * m


def _vmem_capacity_bytes():
    try:
        return int(pltpu.get_tpu_info().vmem_capacity_bytes)
    except Exception:
        return 64 * 1024 * 1024      # conservative default (v7x-sized)


@jax.jit
def mlp_feat_block(x, w1, b1, w2, b2):
    """x: (b, ns, nf, h) -> (b, ns, nf, h); MLP applied over the nf axis.

    Weights use PyTorch nn.Linear layout: w1 (hidden, nf), b1 (hidden,),
    w2 (nf, hidden), b2 (nf,).
    """
    b, ns, nf, h = x.shape
    hidden = w1.shape[0]
    assert w1.shape == (hidden, nf) and w2.shape == (nf, hidden)
    assert b1.shape == (hidden,) and b2.shape == (nf,)

    dtype = x.dtype
    itemsize = jnp.dtype(dtype).itemsize
    N = b * ns * h

    # Lane-dense layout: contract over nf, lanes over b*ns*h.
    # (b, ns, nf, h) -> (nf, b, ns, h): leading-dim transpose (h stays minor),
    # then a free reshape to (nf, N).
    x2 = jnp.transpose(x, (2, 0, 1, 3)).reshape(nf, N)
    b1c = b1.reshape(hidden, 1)
    b2c = b2.reshape(nf, 1)

    # ---- generation-aware tile sizing --------------------------------------
    vmem_cap = _vmem_capacity_bytes()
    if vmem_cap >= 128 * 1024 * 1024:        # v5e / v6e: 128 MiB VMEM
        data_budget = 48 * 1024 * 1024
        vmem_limit = 96 * 1024 * 1024
    else:                                    # v7x: 64 MiB VMEM per TensorCore
        data_budget = 20 * 1024 * 1024
        vmem_limit = 48 * 1024 * 1024

    # Live VMEM bytes per output lane (per column of the tile):
    #   X tile + out tile (each double-buffered), the f32 hidden intermediate
    #   (+ its cast copy for the 2nd matmul), and the f32 result before cast.
    sub = max(8, 32 // itemsize)             # sublane multiple: 8 f32 / 16 bf16 / 32 i8
    nf_pad = _round_up(nf, sub)
    hidden_pad = _round_up(hidden, 8)
    per_lane = (4 * nf_pad * itemsize
                + hidden_pad * (4 + itemsize)
                + nf_pad * 4)
    tn_max = max(128, (data_budget // per_lane) // 128 * 128)

    # Aim for ~8 grid steps (>=3-4 per v7x TensorCore) while every step still
    # carries a full 128-lane tile; the VMEM cap wins for very large N.
    min_steps = 8
    tn = min(tn_max, max(128, _round_up(pl.cdiv(N, min_steps), 128)))

    g = pl.cdiv(N, tn)
    if g > 1 and g % 2 == 1:
        g += 1                               # even grid: balance v7x's two TCs
    num_lanes = g * tn
    if num_lanes != N:
        x2 = jnp.pad(x2, ((0, 0), (0, num_lanes - N)))

    flops = 4 * num_lanes * nf * hidden      # two matmuls
    bytes_accessed = ((2 * nf * num_lanes + 2 * nf * hidden) * itemsize
                      + (nf + hidden) * 4)

    out2 = pl.pallas_call(
        _mlp_feat_kernel,
        out_shape=jax.ShapeDtypeStruct((nf, num_lanes), dtype),
        grid_spec=pltpu.PrefetchScalarGridSpec(
            num_scalar_prefetch=0,
            grid=(g,),
            in_specs=[
                pl.BlockSpec((nf, tn), lambda i: (0, i)),        # X tile (lane-dense)
                pl.BlockSpec((hidden, nf), lambda i: (0, 0)),    # W1 (resident)
                pl.BlockSpec((hidden, 1), lambda i: (0, 0)),     # b1
                pl.BlockSpec((nf, hidden), lambda i: (0, 0)),    # W2 (resident)
                pl.BlockSpec((nf, 1), lambda i: (0, 0)),         # b2
            ],
            out_specs=pl.BlockSpec((nf, tn), lambda i: (0, i)),
        ),
        compiler_params=pltpu.CompilerParams(
            dimension_semantics=("parallel",),
            vmem_limit_bytes=vmem_limit,
        ),
        cost_estimate=pl.CostEstimate(
            flops=flops, transcendentals=0, bytes_accessed=bytes_accessed),
    )(x2, w1, b1c, w2, b2c)

    if num_lanes != N:
        out2 = out2[:, :N]
    # (nf, N) -> (nf, b, ns, h) -> (b, ns, nf, h)
    return jnp.transpose(out2.reshape(nf, b, ns, h), (1, 2, 0, 3))


def _reference(x, w1, b1, w2, b2):
    xt = jnp.swapaxes(x, -1, -2).astype(jnp.float32)          # (b, ns, h, nf)
    h1 = jnp.maximum(xt @ w1.T.astype(jnp.float32) + b1.astype(jnp.float32), 0.0)
    y = h1 @ w2.T.astype(jnp.float32) + b2.astype(jnp.float32)
    return jnp.swapaxes(y, -1, -2).astype(x.dtype)            # (b, ns, nf, h)


if __name__ == "__main__":
    # Small shapes consistent with the module: (b, ns, nf, h)
    b, ns, nf, h = 2, 8, 4, 16
    hidden = 32

    key = jax.random.PRNGKey(0)
    kx, k1, k2, k3, k4 = jax.random.split(key, 5)

    x = jax.random.normal(kx, (b, ns, nf, h), dtype=jnp.float32)

    # PyTorch nn.Linear layouts: Linear(nf, hidden).weight -> (hidden, nf), etc.
    w1 = jax.random.normal(k1, (hidden, nf), dtype=jnp.float32) * 0.1
    b1 = jax.random.normal(k2, (hidden,), dtype=jnp.float32) * 0.1
    w2 = jax.random.normal(k3, (nf, hidden), dtype=jnp.float32) * 0.1
    b2 = jax.random.normal(k4, (nf,), dtype=jnp.float32) * 0.1

    out = mlp_feat_block(x, w1, b1, w2, b2)
    out = jax.block_until_ready(out)

    ref = _reference(x, w1, b1, w2, b2)
    assert out.shape == x.shape
    assert jnp.allclose(out, ref, atol=1e-4, rtol=1e-4), "mismatch vs reference"

    print("KERNEL_OK")
</pallas_src>

<mosaic_0001>
module attributes {stable_mosaic.version = 11 : i64} {
  func.func @_mlp_feat_kernel(%arg0: i32, %arg1: memref<4x128xf32, #tpu.memory_space<vmem>>, %arg2: memref<32x4xf32, #tpu.memory_space<vmem>>, %arg3: memref<32x1xf32, #tpu.memory_space<vmem>>, %arg4: memref<4x32xf32, #tpu.memory_space<vmem>>, %arg5: memref<4x1xf32, #tpu.memory_space<vmem>>, %arg6: memref<4x128xf32, #tpu.memory_space<vmem>>) attributes {dimension_semantics = [#tpu.dimension_semantics<parallel>], iteration_bounds = array<i64: 2>, scalar_prefetch = 0 : i64, scratch_operands = 0 : i64, tpu.core_type = #tpu.core_type<tc>, window_params = [{transform_indices = @transform_0, window_bounds = array<i64: 4, 128>}, {pipeline_mode = #tpu.pipeline_mode<synchronous>, transform_indices = @transform_1, window_bounds = array<i64: 32, 4>}, {pipeline_mode = #tpu.pipeline_mode<synchronous>, transform_indices = @transform_2, window_bounds = array<i64: 32, 1>}, {pipeline_mode = #tpu.pipeline_mode<synchronous>, transform_indices = @transform_3, window_bounds = array<i64: 4, 32>}, {pipeline_mode = #tpu.pipeline_mode<synchronous>, transform_indices = @transform_4, window_bounds = array<i64: 4, 1>}, {transform_indices = @transform_5, window_bounds = array<i64: 4, 128>}]} {
    %c0 = arith.constant 0 : index
    %c0_0 = arith.constant 0 : index
    %0 = vector.load %arg1[%c0, %c0_0] : memref<4x128xf32, #tpu.memory_space<vmem>>, vector<4x128xf32>
    %c0_1 = arith.constant 0 : index
    %c0_2 = arith.constant 0 : index
    %1 = vector.load %arg2[%c0_1, %c0_2] : memref<32x4xf32, #tpu.memory_space<vmem>>, vector<32x4xf32>
    %cst = arith.constant dense<0.000000e+00> : vector<32x128xf32>
    %2 = tpu.matmul %1, %0, %cst {dimension_numbers = #tpu.dot_dimension_numbers<[1], [0], [0], [1], [0, 0, 1, 1], [], []>} : vector<32x4xf32>, vector<4x128xf32>, vector<32x128xf32> -> vector<32x128xf32>
    %c0_3 = arith.constant 0 : index
    %c0_4 = arith.constant 0 : index
    %3 = vector.load %arg3[%c0_3, %c0_4] : memref<32x1xf32, #tpu.memory_space<vmem>>, vector<32x1xf32>
    %4 = vector.broadcast %3 : vector<32x1xf32> to vector<32x128xf32>
    %5 = arith.addf %2, %4 : vector<32x128xf32>
    %cst_5 = arith.constant 0.000000e+00 : f32
    %6 = vector.broadcast %cst_5 : f32 to vector<32x128xf32>
    %7 = arith.maximumf %5, %6 : vector<32x128xf32>
    %c0_6 = arith.constant 0 : index
    %c0_7 = arith.constant 0 : index
    %8 = vector.load %arg4[%c0_6, %c0_7] : memref<4x32xf32, #tpu.memory_space<vmem>>, vector<4x32xf32>
    %cst_8 = arith.constant dense<0.000000e+00> : vector<4x128xf32>
    %9 = tpu.matmul %8, %7, %cst_8 {dimension_numbers = #tpu.dot_dimension_numbers<[1], [0], [0], [1], [0, 0, 1, 1], [], []>} : vector<4x32xf32>, vector<32x128xf32>, vector<4x128xf32> -> vector<4x128xf32>
    %c0_9 = arith.constant 0 : index
    %c0_10 = arith.constant 0 : index
    %10 = vector.load %arg5[%c0_9, %c0_10] : memref<4x1xf32, #tpu.memory_space<vmem>>, vector<4x1xf32>
    %11 = vector.broadcast %10 : vector<4x1xf32> to vector<4x128xf32>
    %12 = arith.addf %9, %11 : vector<4x128xf32>
    %c0_11 = arith.constant 0 : index
    %c0_12 = arith.constant 0 : index
    %13 = vector.load %arg6[%c0_11, %c0_12] : memref<4x128xf32, #tpu.memory_space<vmem>>, vector<4x128xf32>
    tpu.vector_store %arg6[%c0_11, %c0_12], %12 {strides = array<i32>} : memref<4x128xf32, #tpu.memory_space<vmem>>, vector<4x128xf32>,
    return
  }
  func.func @transform_0(%arg0: i32) -> (i32, i32) {
    %c0_i32 = arith.constant 0 : i32
    %c0_i32_0 = arith.constant 0 : i32
    return %c0_i32, %arg0 : i32, i32
  }
  func.func @transform_1(%arg0: i32) -> (i32, i32) {
    %c0_i32 = arith.constant 0 : i32
    %c0_i32_0 = arith.constant 0 : i32
    %c0_i32_1 = arith.constant 0 : i32
    return %c0_i32, %c0_i32_0 : i32, i32
  }
  func.func @transform_2(%arg0: i32) -> (i32, i32) {
    %c0_i32 = arith.constant 0 : i32
    %c0_i32_0 = arith.constant 0 : i32
    %c0_i32_1 = arith.constant 0 : i32
    return %c0_i32, %c0_i32_0 : i32, i32
  }
  func.func @transform_3(%arg0: i32) -> (i32, i32) {
    %c0_i32 = arith.constant 0 : i32
    %c0_i32_0 = arith.constant 0 : i32
    %c0_i32_1 = arith.constant 0 : i32
    return %c0_i32, %c0_i32_0 : i32, i32
  }
  func.func @transform_4(%arg0: i32) -> (i32, i32) {
    %c0_i32 = arith.constant 0 : i32
    %c0_i32_0 = arith.constant 0 : i32
    %c0_i32_1 = arith.constant 0 : i32
    return %c0_i32, %c0_i32_0 : i32, i32
  }
  func.func @transform_5(%arg0: i32) -> (i32, i32) {
    %c0_i32 = arith.constant 0 : i32
    %c0_i32_0 = arith.constant 0 : i32
    return %c0_i32, %arg0 : i32, i32
  }
}

</mosaic_0001>

<bundles_post_ra>
// kernel: mlp_feat_block.1
= control target key start
LH: loop header
LB: loop body
LE: loop exit
PB: predicated region body
PF: predicated region fallthrough
CT: control target
= control target key end

     0   :  { %s588_s18 = smov 0   ;;  %s646_s0 = inlined_call_operand.vmem [shape: f32[4,256], index: 0, kind: input, shape index: {}]   ;;  %s647_s1 = inlined_call_operand.vmem [shape: f32[32,4], index: 1, kind: input, shape index: {}]   ;;  %s648_s2 = inlined_call_operand.vmem [shape: f32[32,1], index: 2, kind: input, shape index: {}]   ;;  %s649_s3 = inlined_call_operand.vmem [shape: f32[4,32], index: 3, kind: input, shape index: {}]   ;;  %s650_s4 = inlined_call_operand.vmem [shape: f32[4,1], index: 4, kind: input, shape index: {}]   ;;  %s651_s5 = inlined_call_operand.vmem [shape: f32[4,256], index: 5, kind: output, shape index: {}]  }
   0x1 LB: > { %s490_s19 = sadd.s32 4294967295, %s553_s18   ;;  %p494_p0 = scmp.ge.s32.totalorder %s553_s18, 1  ;;  %s553_s18 = sphi %s588_s18, %s15_s18  }
   0x2   : > { %p186_p1 = scmp.lt.s32.totalorder %s553_s18, 3 }
   0x4   : > { %p187_p2 = pnand %p494_p0, %p186_p1 }
   0x5   : > { %p212_p3 = scmp.lt.s32.totalorder (!%p187_p2), %s490_s19, 1 }
   0x6   : > { %190 = sbr.rel (%p187_p2) target bundleno = 421 (0x1a5), region = 40 }
   0xb   : > { %v221_v0 = vld [vmem:[%s647_s1] sm:$0xff]  ;;  %vm249_vm0 = vcmask 31744   ;;  %v228_v1 = vld [vmem:[%s648_s2 + $0x18] sm:$0xff]  ;;  %s653_s19 = smov (!%p212_p3, %s490_s19), 1  ;;  %v555_v2 = vmov 0   ;;  %v226_v3 = vld [vmem:[%s648_s2 + $0x8] sm:$0xff] }
   0xc   : > { %517 = vmatprep.mubr.msk.f32.mxu0 %vm249_vm0, %v221_v0  ;;  %545 = vset.pattern.permute.xlu0 %v555_v2  ;;  %s495_s26 = sshll.u32 %s653_s19, 2  ;;  %vm262_vm1 = vcmask 1043456   ;;  %v227_v4 = vld [vmem:[%s648_s2 + $0x10] sm:$0xff]  ;;  %v225_v5 = vld [vmem:[%s648_s2] sm:$0xff]  ;;  %v222_v7 = vld [vmem:[%s647_s1 + $0x8] sm:$0xff]  ;;  %v556_v11 = vmov 0.0  }
   0xd   : > { %546 = vset.pattern.permute.xlu1 %v555_v2  ;;  %246 = vperm.xlu0 %545, %v228_v1   ;;  %s215_s6 = scalar_lea.vmem %s646_s0, %s495_s26  ;;  %v223_v8 = vld [vmem:[%s647_s1 + $0x10] sm:$0xff]  ;;  %v356_v9 = vld [vmem:[%s650_s4] sm:$0xf]  ;;  %v224_v10 = vld [vmem:[%s647_s1 + $0x18] sm:$0xff]  ;;  %vm557_vm2 = vmmov 0   ;;  %vm362_vm3 = vcmask 261120   ;;  %s219_s23 = scalar_lea.vmem %s651_s5, %s495_s26 }
   0xe   : > { %236 = vperm.xlu1 %546, %v226_v3   ;;  %v220_v6 = vld [vmem:[%s215_s6] sm:$0xf]  ;;  %523 = vmatprep.subr.mxu1 %v556_v11 }
   0xf   : > { %515 = vmatprep.subr.msk.mxu0 %vm262_vm1, %v220_v6  ;;  %531 = vmatprep.mubr.msk.f32.mxu1 %vm557_vm2, %v556_v11  ;;  %v355_v28 = vld [vmem:[%s649_s3] sm:$0xf] }
  0x10   : > { %516 = vmatpush3.msk.msra.mxu0 %vm262_vm1, %v220_v6 }
  0x11   : > { %241 = vperm.xlu0 %545, %v227_v4   ;;  %518 = vmatmul.mubr.msk.f32.vlgmr.msra.gmra.mxu0 %vm249_vm0, %v222_v7 }
  0x12   : > { %231 = vperm.xlu1 %546, %v225_v5   ;;  %520 = vmatprep.mubr.msk.f32.mxu0 %vm249_vm0, %v223_v8 }
  0x15   : > { %359 = vperm.xlu0 %545, %v356_v9   ;;  %521 = vmatmul.mubr.msk.f32.gmra.mxu0 %vm249_vm0, %v224_v10 }
  0x88   : > { %v247_v12 = vpop.permute.xlu0 %246 }
  0x89   : > { %v237_v13 = vpop.permute.xlu1 %236 }
  0x8c   : > { %v242_v17 = vpop.permute.xlu0 %241 }
  0x8d   : > { %v232_v19 = vpop.permute.xlu1 %231 }
  0x90   : > { %v360_v29 = vpop.permute.xlu0 %359 }
  0xd1   : > { %v519_v14 = vpop.f32.mrf.mxu0 }
  0xd2   : > { %v338_v21 = vadd.f32 %v519_v14, %v237_v13 }
  0xd3   : > { %v332_v15 = vpop.f32.mrf.mxu0 }
  0xd4   : > { %v333_v24 = vadd.f32 %v332_v15, %v232_v19  ;;  %v352_v26 = vmax.f32 %v338_v21, 0.0 }
  0xd5   : > { %v522_v16 = vpop.f32.mrf.mxu0 }
  0xd6   : > { %v348_v18 = vadd.f32 %v522_v16, %v247_v12  ;;  %v351_v27 = vmax.f32 %v333_v24, 0.0 }
  0xd7   : > { %v342_v20 = vpop.f32.mrf.mxu0 }
  0xd8   : > { %v354_v22 = vmax.f32 %v348_v18, 0.0  ;;  %v343_v23 = vadd.f32 %v342_v20, %v242_v17 }
  0xda   : > { %v353_v25 = vmax.f32 %v343_v23, 0.0  ;;  %524 = vmatpush3.msra.mxu1 %v354_v22 }
  0xdb   : > { %525 = vmatprep.subr.mxu1 %v556_v11 }
  0xdc   : > { %526 = vmatpush3.msra.mxu1 %v353_v25 }
  0xdd   : > { %527 = vmatprep.subr.mxu1 %v556_v11 }
  0xde   : > { %528 = vmatpush3.msra.mxu1 %v352_v26 }
  0xdf   : > { %529 = vmatprep.subr.mxu1 %v556_v11 }
  0xe0   : > { %530 = vmatpush3.msra.mxu1 %v351_v27 }
  0xe1   : > { %532 = vmatmul.mubr.msk.f32.vlgmr.msra.gmra.mxu1 %vm362_vm3, %v355_v28 }
 0x1a1   : > { %v432_v30 = vpop.f32.mrf.mxu1 }
 0x1a2   : > { %v433_v31 = vadd.f32 %v432_v30, %v360_v29 }
 0x1a3   : > { %v533_v32 = vpop.f32.mrf.mxu1 }
 0x1a4   : > { %436 = vst [vmem:[%s219_s23] sm:$0xf] %v433_v31 }
 0x1a5 PF: > { %s15_s18 = sadd.s32 1, %s553_s18  }
 0x1a6   : > { %p12_p4 = scmp.ge.s32.totalorder %s15_s18, 4  }
 0x1a8   :  { %14 = sbr.rel (!%p12_p4) target bundleno = 1 (0x1), region = 70 }

</bundles_post_ra>
